<compile_context>
chip_gen: v7x
topology: tpu7x:2x2x1
jax: 0.10.0
libtpu: 0.0.40
codegen_flags: <defaults>
</compile_context>

<pallas_src>
import jax
import jax.numpy as jnp
from jax.experimental import pallas as pl
from jax.experimental.pallas import tpu as pltpu

STATE_DIM = 3
H1, H2, H3 = 256, 400, 128
STATE_PAD = 8      # 3 -> 8   (sublane-friendly K for fc1)
H2_PAD = 512       # 400 -> 512 (lane-aligned; same vreg count as 400)


def _round_up(x, m):
    return ((x + m - 1) // m) * m


def _actor_kernel(s_ref, w1_ref, b1_ref, w2_ref, b2_ref, w3_ref, b3_ref,
                  w4_ref, b4_ref, out_ref):
    # fc1 + relu : (TB,8) @ (8,256). K is tiny -> keep f32 (cost negligible).
    x = jnp.dot(s_ref[...], w1_ref[...], preferred_element_type=jnp.float32)
    x = jnp.maximum(x + b1_ref[...], 0.0)

    # fc2 + relu : (TB,256) @ (256,512). bf16 operands, f32 accumulation.
    x = jnp.dot(x.astype(jnp.bfloat16), w2_ref[...],
                preferred_element_type=jnp.float32)
    x = jnp.maximum(x + b2_ref[...], 0.0)

    # fc3 + relu : (TB,512) @ (512,128). bf16 operands, f32 accumulation.
    x = jnp.dot(x.astype(jnp.bfloat16), w3_ref[...],
                preferred_element_type=jnp.float32)
    x = jnp.maximum(x + b3_ref[...], 0.0)

    # out + tanh : N=1 matmul expressed as a lane reduction (VPU/XLU) instead
    # of a 1-column MXU pass; tanh goes to the EUP.
    val = jnp.sum(x * w4_ref[...], axis=-1, keepdims=True) + b4_ref[...]
    out_ref[...] = jnp.tanh(val)


def prepare_params(params):
    """One-time conversion of (in,out)-layout f32 params into kernel-ready tensors.

    Zero-padding keeps the math exact: padded state features / fc1 rows are
    zero, padded fc2 columns + biases are zero (so padded activations are 0),
    and padded fc3 rows are zero (so they contribute nothing).
    """
    w1, b1, w2, b2, w3, b3, w4, b4 = params
    # fc1: pad K 3 -> 8 with zero rows; small -> keep f32.
    w1p = jnp.zeros((STATE_PAD, H1), jnp.float32).at[:STATE_DIM, :].set(w1)
    b1p = b1.reshape(1, H1).astype(jnp.float32)
    # fc2: pad N 400 -> 512 with zero columns; weights bf16.
    w2p = (jnp.zeros((H1, H2_PAD), jnp.float32).at[:, :H2].set(w2)
           .astype(jnp.bfloat16))
    b2p = jnp.zeros((1, H2_PAD), jnp.float32).at[:, :H2].set(b2.reshape(1, H2))
    # fc3: pad K 400 -> 512 with zero rows; weights bf16.
    w3p = (jnp.zeros((H2_PAD, H3), jnp.float32).at[:H2, :].set(w3)
           .astype(jnp.bfloat16))
    b3p = b3.reshape(1, H3).astype(jnp.float32)
    # out: row vector for the lane reduction; tiny -> keep f32.
    w4p = w4.reshape(1, H3).astype(jnp.float32)
    b4p = b4.reshape(1, 1).astype(jnp.float32)
    return (w1p, b1p, w2p, b2p, w3p, b3p, w4p, b4p)


@jax.jit
def pendulum_actor_forward(state, kparams):
    """state: (B, 3) f32 -> action: (B, 1) f32 in [-1, 1]."""
    w1, b1, w2, b2, w3, b3, w4, b4 = kparams
    B = state.shape[0]
    tile_b = min(512, _round_up(B, 8))          # big-batch tiles of 512 rows
    Bp = _round_up(B, tile_b)

    # Pad batch to the tile and state features 3 -> 8 (zeros; exact).
    s = jnp.pad(state.astype(jnp.float32),
                ((0, Bp - B), (0, STATE_PAD - state.shape[1])))

    weights = (w1, b1, w2, b2, w3, b3, w4, b4)
    # Constant index_map -> weights are fetched once and stay VMEM-resident
    # across all batch-tile iterations.
    weight_specs = [pl.BlockSpec(w.shape, lambda i: (0, 0)) for w in weights]

    out = pl.pallas_call(
        _actor_kernel,
        out_shape=jax.ShapeDtypeStruct((Bp, 1), jnp.float32),
        grid=(Bp // tile_b,),
        in_specs=[pl.BlockSpec((tile_b, STATE_PAD), lambda i: (i, 0))]
                 + weight_specs,
        out_specs=pl.BlockSpec((tile_b, 1), lambda i: (i, 0)),
        compiler_params=pltpu.CompilerParams(
            dimension_semantics=("parallel",),      # batch tiles independent
            vmem_limit_bytes=32 * 1024 * 1024),
    )(s, *weights)
    return out[:B]


def init_params(key):
    """Deterministic init matching PyTorch nn.Linear (stored as (in, out))."""
    dims = [(STATE_DIM, H1), (H1, H2), (H2, H3), (H3, 1)]
    params = []
    for fan_in, fan_out in dims:
        key, kw, kb = jax.random.split(key, 3)
        bound = 1.0 / jnp.sqrt(jnp.float32(fan_in))
        w = jax.random.uniform(kw, (fan_in, fan_out), jnp.float32, -bound, bound)
        b = jax.random.uniform(kb, (fan_out,), jnp.float32, -bound, bound)
        params += [w, b]
    return tuple(params)


def reference_forward(state, params):
    w1, b1, w2, b2, w3, b3, w4, b4 = params
    x = jax.nn.relu(state @ w1 + b1)
    x = jax.nn.relu(x @ w2 + b2)
    x = jax.nn.relu(x @ w3 + b3)
    return jnp.tanh(x @ w4 + b4)


if __name__ == "__main__":
    key = jax.random.PRNGKey(0)
    kp, ks = jax.random.split(key, 2)

    B = 2
    params = init_params(kp)                 # f32 torch-shaped params
    kparams = prepare_params(params)         # one-time kernel-ready prep
    state = jax.random.normal(ks, (B, STATE_DIM), jnp.float32)

    act = pendulum_actor_forward(state, kparams)
    act = jax.block_until_ready(act)

    ref = reference_forward(state, params)   # full-f32 reference
    assert act.shape == (B, 1)
    # bf16 weights / activations on fc2+fc3 -> relaxed tolerance vs f32 ref.
    assert jnp.allclose(act, ref, atol=3e-2, rtol=3e-2), (act, ref)
    assert bool(jnp.all(jnp.abs(act) <= 1.0))

    print("KERNEL_OK")
</pallas_src>

<mosaic_0001>
module attributes {stable_mosaic.version = 11 : i64} {
  func.func @_actor_kernel(%arg0: i32, %arg1: memref<8x8xf32, #tpu.memory_space<vmem>>, %arg2: memref<8x256xf32, #tpu.memory_space<vmem>>, %arg3: memref<1x256xf32, #tpu.memory_space<vmem>>, %arg4: memref<256x512xbf16, #tpu.memory_space<vmem>>, %arg5: memref<1x512xf32, #tpu.memory_space<vmem>>, %arg6: memref<512x128xbf16, #tpu.memory_space<vmem>>, %arg7: memref<1x128xf32, #tpu.memory_space<vmem>>, %arg8: memref<1x128xf32, #tpu.memory_space<vmem>>, %arg9: memref<1x1xf32, #tpu.memory_space<vmem>>, %arg10: memref<8x1xf32, #tpu.memory_space<vmem>>) attributes {dimension_semantics = [#tpu.dimension_semantics<parallel>], iteration_bounds = array<i64: 1>, scalar_prefetch = 0 : i64, scratch_operands = 0 : i64, tpu.core_type = #tpu.core_type<tc>, window_params = [{transform_indices = @transform_0, window_bounds = array<i64: 8, 8>}, {pipeline_mode = #tpu.pipeline_mode<synchronous>, transform_indices = @transform_1, window_bounds = array<i64: 8, 256>}, {pipeline_mode = #tpu.pipeline_mode<synchronous>, transform_indices = @transform_2, window_bounds = array<i64: 1, 256>}, {pipeline_mode = #tpu.pipeline_mode<synchronous>, transform_indices = @transform_3, window_bounds = array<i64: 256, 512>}, {pipeline_mode = #tpu.pipeline_mode<synchronous>, transform_indices = @transform_4, window_bounds = array<i64: 1, 512>}, {pipeline_mode = #tpu.pipeline_mode<synchronous>, transform_indices = @transform_5, window_bounds = array<i64: 512, 128>}, {pipeline_mode = #tpu.pipeline_mode<synchronous>, transform_indices = @transform_6, window_bounds = array<i64: 1, 128>}, {pipeline_mode = #tpu.pipeline_mode<synchronous>, transform_indices = @transform_7, window_bounds = array<i64: 1, 128>}, {pipeline_mode = #tpu.pipeline_mode<synchronous>, transform_indices = @transform_8, window_bounds = array<i64: 1, 1>}, {transform_indices = @transform_9, window_bounds = array<i64: 8, 1>}]} {
    %c0 = arith.constant 0 : index
    %c0_0 = arith.constant 0 : index
    %0 = vector.load %arg1[%c0, %c0_0] : memref<8x8xf32, #tpu.memory_space<vmem>>, vector<8x8xf32>
    %c0_1 = arith.constant 0 : index
    %c0_2 = arith.constant 0 : index
    %1 = vector.load %arg2[%c0_1, %c0_2] : memref<8x256xf32, #tpu.memory_space<vmem>>, vector<8x256xf32>
    %cst = arith.constant dense<0.000000e+00> : vector<8x256xf32>
    %2 = tpu.matmul %0, %1, %cst {dimension_numbers = #tpu.dot_dimension_numbers<[1], [0], [0], [1], [0, 0, 1, 1], [], []>} : vector<8x8xf32>, vector<8x256xf32>, vector<8x256xf32> -> vector<8x256xf32>
    %c0_3 = arith.constant 0 : index
    %c0_4 = arith.constant 0 : index
    %3 = vector.load %arg3[%c0_3, %c0_4] : memref<1x256xf32, #tpu.memory_space<vmem>>, vector<1x256xf32>
    %4 = vector.broadcast %3 : vector<1x256xf32> to vector<8x256xf32>
    %5 = arith.addf %2, %4 : vector<8x256xf32>
    %cst_5 = arith.constant 0.000000e+00 : f32
    %6 = vector.broadcast %cst_5 : f32 to vector<8x256xf32>
    %7 = arith.maximumf %5, %6 : vector<8x256xf32>
    %8 = arith.truncf %7 : vector<8x256xf32> to vector<8x256xbf16>
    %c0_6 = arith.constant 0 : index
    %c0_7 = arith.constant 0 : index
    %9 = vector.load %arg4[%c0_6, %c0_7] : memref<256x512xbf16, #tpu.memory_space<vmem>>, vector<256x512xbf16>
    %cst_8 = arith.constant dense<0.000000e+00> : vector<8x512xf32>
    %10 = tpu.matmul %8, %9, %cst_8 {dimension_numbers = #tpu.dot_dimension_numbers<[1], [0], [0], [1], [0, 0, 1, 1], [], []>} : vector<8x256xbf16>, vector<256x512xbf16>, vector<8x512xf32> -> vector<8x512xf32>
    %c0_9 = arith.constant 0 : index
    %c0_10 = arith.constant 0 : index
    %11 = vector.load %arg5[%c0_9, %c0_10] : memref<1x512xf32, #tpu.memory_space<vmem>>, vector<1x512xf32>
    %12 = vector.broadcast %11 : vector<1x512xf32> to vector<8x512xf32>
    %13 = arith.addf %10, %12 : vector<8x512xf32>
    %cst_11 = arith.constant 0.000000e+00 : f32
    %14 = vector.broadcast %cst_11 : f32 to vector<8x512xf32>
    %15 = arith.maximumf %13, %14 : vector<8x512xf32>
    %16 = arith.truncf %15 : vector<8x512xf32> to vector<8x512xbf16>
    %c0_12 = arith.constant 0 : index
    %c0_13 = arith.constant 0 : index
    %17 = vector.load %arg6[%c0_12, %c0_13] : memref<512x128xbf16, #tpu.memory_space<vmem>>, vector<512x128xbf16>
    %cst_14 = arith.constant dense<0.000000e+00> : vector<8x128xf32>
    %18 = tpu.matmul %16, %17, %cst_14 {dimension_numbers = #tpu.dot_dimension_numbers<[1], [0], [0], [1], [0, 0, 1, 1], [], []>} : vector<8x512xbf16>, vector<512x128xbf16>, vector<8x128xf32> -> vector<8x128xf32>
    %c0_15 = arith.constant 0 : index
    %c0_16 = arith.constant 0 : index
    %19 = vector.load %arg7[%c0_15, %c0_16] : memref<1x128xf32, #tpu.memory_space<vmem>>, vector<1x128xf32>
    %20 = vector.broadcast %19 : vector<1x128xf32> to vector<8x128xf32>
    %21 = arith.addf %18, %20 : vector<8x128xf32>
    %cst_17 = arith.constant 0.000000e+00 : f32
    %22 = vector.broadcast %cst_17 : f32 to vector<8x128xf32>
    %23 = arith.maximumf %21, %22 : vector<8x128xf32>
    %c0_18 = arith.constant 0 : index
    %c0_19 = arith.constant 0 : index
    %24 = vector.load %arg8[%c0_18, %c0_19] : memref<1x128xf32, #tpu.memory_space<vmem>>, vector<1x128xf32>
    %25 = vector.broadcast %24 : vector<1x128xf32> to vector<8x128xf32>
    %26 = arith.mulf %23, %25 : vector<8x128xf32>
    %cst_20 = arith.constant dense<0.000000e+00> : vector<8xf32>
    %27 = vector.multi_reduction <add>, %26, %cst_20 [1] : vector<8x128xf32> to vector<8xf32>
    %28 = vector.shape_cast %27 : vector<8xf32> to vector<8x1xf32>
    %c0_21 = arith.constant 0 : index
    %c0_22 = arith.constant 0 : index
    %29 = vector.load %arg9[%c0_21, %c0_22] : memref<1x1xf32, #tpu.memory_space<vmem>>, vector<1x1xf32>
    %30 = vector.broadcast %29 : vector<1x1xf32> to vector<8x1xf32>
    %31 = arith.addf %28, %30 : vector<8x1xf32>
    %32 = math.tanh %31 : vector<8x1xf32>
    %c0_23 = arith.constant 0 : index
    %c0_24 = arith.constant 0 : index
    %33 = vector.load %arg10[%c0_23, %c0_24] : memref<8x1xf32, #tpu.memory_space<vmem>>, vector<8x1xf32>
    tpu.vector_store %arg10[%c0_23, %c0_24], %32 {strides = array<i32>} : memref<8x1xf32, #tpu.memory_space<vmem>>, vector<8x1xf32>,
    return
  }
  func.func @transform_0(%arg0: i32) -> (i32, i32) {
    %c0_i32 = arith.constant 0 : i32
    %c0_i32_0 = arith.constant 0 : i32
    return %arg0, %c0_i32 : i32, i32
  }
  func.func @transform_1(%arg0: i32) -> (i32, i32) {
    %c0_i32 = arith.constant 0 : i32
    %c0_i32_0 = arith.constant 0 : i32
    %c0_i32_1 = arith.constant 0 : i32
    return %c0_i32, %c0_i32_0 : i32, i32
  }
  func.func @transform_2(%arg0: i32) -> (i32, i32) {
    %c0_i32 = arith.constant 0 : i32
    %c0_i32_0 = arith.constant 0 : i32
    %c0_i32_1 = arith.constant 0 : i32
    return %c0_i32, %c0_i32_0 : i32, i32
  }
  func.func @transform_3(%arg0: i32) -> (i32, i32) {
    %c0_i32 = arith.constant 0 : i32
    %c0_i32_0 = arith.constant 0 : i32
    %c0_i32_1 = arith.constant 0 : i32
    return %c0_i32, %c0_i32_0 : i32, i32
  }
  func.func @transform_4(%arg0: i32) -> (i32, i32) {
    %c0_i32 = arith.constant 0 : i32
    %c0_i32_0 = arith.constant 0 : i32
    %c0_i32_1 = arith.constant 0 : i32
    return %c0_i32, %c0_i32_0 : i32, i32
  }
  func.func @transform_5(%arg0: i32) -> (i32, i32) {
    %c0_i32 = arith.constant 0 : i32
    %c0_i32_0 = arith.constant 0 : i32
    %c0_i32_1 = arith.constant 0 : i32
    return %c0_i32, %c0_i32_0 : i32, i32
  }
  func.func @transform_6(%arg0: i32) -> (i32, i32) {
    %c0_i32 = arith.constant 0 : i32
    %c0_i32_0 = arith.constant 0 : i32
    %c0_i32_1 = arith.constant 0 : i32
    return %c0_i32, %c0_i32_0 : i32, i32
  }
  func.func @transform_7(%arg0: i32) -> (i32, i32) {
    %c0_i32 = arith.constant 0 : i32
    %c0_i32_0 = arith.constant 0 : i32
    %c0_i32_1 = arith.constant 0 : i32
    return %c0_i32, %c0_i32_0 : i32, i32
  }
  func.func @transform_8(%arg0: i32) -> (i32, i32) {
    %c0_i32 = arith.constant 0 : i32
    %c0_i32_0 = arith.constant 0 : i32
    %c0_i32_1 = arith.constant 0 : i32
    return %c0_i32, %c0_i32_0 : i32, i32
  }
  func.func @transform_9(%arg0: i32) -> (i32, i32) {
    %c0_i32 = arith.constant 0 : i32
    %c0_i32_0 = arith.constant 0 : i32
    return %arg0, %c0_i32 : i32, i32
  }
}

</mosaic_0001>

<bundles_post_ra>
// kernel: pendulum_actor_forward.1
= control target key start
LH: loop header
LB: loop body
LE: loop exit
PB: predicated region body
PF: predicated region fallthrough
CT: control target
= control target key end

     0   :  { %s1475_s0 = inlined_call_operand.vmem [shape: f32[8,8], index: 0, kind: input, shape index: {}]   ;;  %s1476_s1 = inlined_call_operand.vmem [shape: f32[8,256], index: 1, kind: input, shape index: {}]   ;;  %s1477_s2 = inlined_call_operand.vmem [shape: f32[1,256], index: 2, kind: input, shape index: {}]   ;;  %s1478_s3 = inlined_call_operand.hbm [shape: bf16[256,512], index: 3, kind: input, shape index: {}]   ;;  %s1479_s4 = inlined_call_operand.vmem [shape: f32[1,512], index: 4, kind: input, shape index: {}]   ;;  %s1480_s5 = inlined_call_operand.hbm [shape: bf16[512,128], index: 5, kind: input, shape index: {}]   ;;  %s1481_s6 = inlined_call_operand.vmem [shape: f32[1,128], index: 6, kind: input, shape index: {}]   ;;  %s1482_s7 = inlined_call_operand.vmem [shape: f32[1,128], index: 7, kind: input, shape index: {}]   ;;  %s1483_s8 = inlined_call_operand.<no memory space> [shape: f32[1,1], index: 8, kind: input, shape index: {}]   ;;  %s1484_s9 = inlined_call_operand.vmem [shape: f32[8,1], index: 9, kind: output, shape index: {}]  }
   0x1   :  { %v14_v0 = vstv %s1483_s8 }
   0x2   :  { %15 = vst [vmem:[#allocation2] sm:$0x1] %v14_v0 }
   0x3   :  { %16 = vsyncpa [#allocation4], 0 }
   0x4   :  { %17 = vsyncpa [#allocation6], 0  ;;  %s1353_s11 = smov [#allocation3]   ;;  %s1305_s15 = scalar_lea.hbm %s1478_s3, 8192 }
   0x5   :  { %s29_s12 = sshll.u32 %s1353_s11, 4  ;;  %p1306_p0 = scmp.ne.s32.totalorder %s1478_s3, %s1305_s15  ;;  %s30_s12 = int_to_ptr.vmem [resolvable:$true] %s29_s12 }
   0x6   :  { %p1309_p1 = scmp.lt.u32.totalorder %s1305_s15, %s1478_s3 }
   0x8   :  { %p1311_p2 = pnand %p1309_p1, %p1306_p0 }
   0xa   :  { %1314 = shalt.err (!%p1311_p2)
}
   0xb   :  { %s1315_s8 = scalar_lea.vmem %s30_s12, 8192  ;;  %p1320_p4 = scmp.lt.s32.totalorder %s30_s12, %s30_s12 }
   0xc   :  { %p1316_p3 = scmp.ne.s32.totalorder %s30_s12, %s1315_s8  ;;  %p1321_p5 = scmp.lt.s32.totalorder %s1315_s8, %s1315_s8 }
   0xe   :  { %p1322_p6 = por %p1321_p5, %p1320_p4 }
  0x10   :  { %p1323_p7 = pnand %p1322_p6, %p1316_p3 }
  0x12   :  { %1326 = shalt.err (!%p1323_p7)
}
  0x13   :  { %s1354_s20 = smov 256   ;;  %s1355_s21 = smov 16  }
  0x14   :  { %35 = dma.hbm_to_vmem [thread:$0]  %s1478_s3, 8192, %s30_s12, [#allocation4], %s1354_s20, %s1354_s20, %s1355_s21  }
  0x15   :  { %s1356_s24 = smov [#allocation5]   ;;  %s1327_s28 = scalar_lea.hbm %s1480_s5, 4096 }
  0x16   :  { %s43_s25 = sshll.u32 %s1356_s24, 4  ;;  %p1328_p8 = scmp.ne.s32.totalorder %s1480_s5, %s1327_s28  ;;  %s44_s25 = int_to_ptr.vmem [resolvable:$true] %s43_s25 }
  0x17   :  { %p1331_p9 = scmp.lt.u32.totalorder %s1327_s28, %s1480_s5 }
  0x19   :  { %p1333_p10 = pnand %p1331_p9, %p1328_p8 }
  0x1b   :  { %1336 = shalt.err (!%p1333_p10)
}
  0x1c   :  { %s1337_s13 = scalar_lea.vmem %s44_s25, 4096  ;;  %p1342_p12 = scmp.lt.s32.totalorder %s44_s25, %s44_s25 }
  0x1d   :  { %p1338_p11 = scmp.ne.s32.totalorder %s44_s25, %s1337_s13  ;;  %p1343_p13 = scmp.lt.s32.totalorder %s1337_s13, %s1337_s13 }
  0x1f   :  { %p1344_p0 = por %p1343_p13, %p1342_p12 }
  0x21   :  { %p1345_p1 = pnand %p1344_p0, %p1338_p11 }
  0x23   :  { %1348 = shalt.err (!%p1345_p1)
}
  0x24   :  { %s1357_s3 = smov 64   ;;  %s1358_s12 = smov 4  }
  0x25   :  { %49 = dma.hbm_to_vmem [thread:$0]  %s1480_s5, 4096, %s44_s25, [#allocation6], %s1357_s3, %s1357_s3, %s1358_s12  }
  0x26   :  { %1349 = dma.done.wait [#allocation4], 8192  }
  0x27   :  { %1350 = vsyncadd [#allocation4], 4294959104 }
  0x28   :  { %1351 = dma.done.wait [#allocation6], 4096  }
  0x29   :  { %1352 = vsyncadd [#allocation6], 4294963200  ;;  %v1359_v1 = vmov 0.0   ;;  %v65_v2 = vld [vmem:[%s1476_s1 + $0x8] sm:$0xff]  ;;  %v64_v3 = vld [vmem:[%s1476_s1] sm:$0xff]  ;;  %vm78_vm0 = vcmask 64512  }
  0x2a   :  { %146 = vmatprep.mubr.f32.mxu0 %v1359_v1  ;;  %v63_v4 = vld [vmem:[%s1475_s0] sm:$0xff]  ;;  %82 = vmatprep.subr.mxu0 %v65_v2  ;;  %v1177_v6 = vld [vmem:[#allocation3 + $0x8] ss:$16 sps:$4 sm:$0xff]   ;;  %vm1016_vm1 = vcmask 7168  }
  0x2b   :  { %v1175_v5 = vld [vmem:[#allocation3 + $0x4] ss:$16 sps:$4 sm:$0xff]   ;;  %83 = vmatpush1.msra.mxu0 %v64_v3  ;;  %v1179_v7 = vld [vmem:[#allocation3 + $0xc] ss:$16 sps:$4 sm:$0xff]   ;;  %v1180_v8 = vld [vmem:[#allocation3] ss:$16 sps:$4 sm:$0xff]  }
  0x2c   :  { %1024 = vmatmul.mubr.msk.f32.vlgmr.msra.gmra.mrb[0].mxu0 %vm78_vm0, %v63_v4  ;;  %563 = vmatprep.subr.bf16.mxu1 %v1175_v5  ;;  %v1181_v9 = vld [vmem:[#allocation3 + $0x24] ss:$16 sps:$4 sm:$0xff]   ;;  %v1183_v10 = vld [vmem:[#allocation3 + $0x28] ss:$16 sps:$4 sm:$0xff]   ;;  %v1185_v11 = vld [vmem:[#allocation3 + $0x2c] ss:$16 sps:$4 sm:$0xff]  }
  0x2d   :  { %604 = vmatprep.subr.bf16.mxu0 %v1179_v7  ;;  %564 = vmatpush1.bf16.msra.mxu1 %v1180_v8  ;;  %v1186_v12 = vld [vmem:[#allocation3 + $0x20] ss:$16 sps:$4 sm:$0xff]   ;;  %v1187_v13 = vld [vmem:[#allocation3 + $0x44] ss:$16 sps:$4 sm:$0xff]   ;;  %v1189_v14 = vld [vmem:[#allocation3 + $0x48] ss:$16 sps:$4 sm:$0xff]   ;;  %v68_v7 = vlaneseq }
  0x2e   :  { %605 = vmatpush1.bf16.msra.mxu0 %v1177_v6  ;;  %565 = vmatprep.subr.bf16.mxu1 %v1181_v9  ;;  %v1191_v15 = vld [vmem:[#allocation3 + $0x4c] ss:$16 sps:$4 sm:$0xff]   ;;  %v1192_v16 = vld [vmem:[#allocation3 + $0x40] ss:$16 sps:$4 sm:$0xff]   ;;  %v1193_v17 = vld [vmem:[#allocation3 + $0x64] ss:$16 sps:$4 sm:$0xff]  }
  0x2f   :  { %606 = vmatprep.subr.bf16.mxu0 %v1185_v11  ;;  %v1197_v18 = vld [vmem:[#allocation3 + $0x6c] ss:$16 sps:$4 sm:$0xff]   ;;  %v1195_v19 = vld [vmem:[#allocation3 + $0x68] ss:$16 sps:$4 sm:$0xff]   ;;  %v1198_v20 = vld [vmem:[#allocation3 + $0x60] ss:$16 sps:$4 sm:$0xff]  }
  0x30   :  { %v1199_v21 = vld [vmem:[#allocation3 + $0x84] ss:$16 sps:$4 sm:$0xff]   ;;  %v1203_v22 = vld [vmem:[#allocation3 + $0x8c] ss:$16 sps:$4 sm:$0xff]   ;;  %v1201_v23 = vld [vmem:[#allocation3 + $0x88] ss:$16 sps:$4 sm:$0xff]  }
  0x31   :  { %566 = vmatpush1.bf16.msra.mxu1 %v1186_v12  ;;  %v1204_v24 = vld [vmem:[#allocation3 + $0x80] ss:$16 sps:$4 sm:$0xff]   ;;  %v1205_v25 = vld [vmem:[#allocation3 + $0xa4] ss:$16 sps:$4 sm:$0xff]   ;;  %v1209_v26 = vld [vmem:[#allocation3 + $0xac] ss:$16 sps:$4 sm:$0xff]  }
  0x32   :  { %607 = vmatpush1.bf16.msra.mxu0 %v1183_v10  ;;  %567 = vmatprep.subr.bf16.mxu1 %v1187_v13  ;;  %v1207_v27 = vld [vmem:[#allocation3 + $0xa8] ss:$16 sps:$4 sm:$0xff]   ;;  %v1210_v28 = vld [vmem:[#allocation3 + $0xa0] ss:$16 sps:$4 sm:$0xff]   ;;  %v1211_v29 = vld [vmem:[#allocation3 + $0xc4] ss:$16 sps:$4 sm:$0xff]  }
  0x33   :  { %608 = vmatprep.subr.bf16.mxu0 %v1191_v15  ;;  %v1215_v30 = vld [vmem:[#allocation3 + $0xcc] ss:$16 sps:$4 sm:$0xff]   ;;  %v1213_v31 = vld [vmem:[#allocation3 + $0xc8] ss:$16 sps:$4 sm:$0xff]   ;;  %v1216_v32 = vld [vmem:[#allocation3 + $0xc0] ss:$16 sps:$4 sm:$0xff]  }
  0x34   :  { %v1217_v33 = vld [vmem:[#allocation3 + $0xe4] ss:$16 sps:$4 sm:$0xff]   ;;  %v1221_v34 = vld [vmem:[#allocation3 + $0xec] ss:$16 sps:$4 sm:$0xff]   ;;  %v1219_v35 = vld [vmem:[#allocation3 + $0xe8] ss:$16 sps:$4 sm:$0xff]  }
  0x35   :  { %568 = vmatpush1.bf16.msra.mxu1 %v1192_v16  ;;  %v1222_v36 = vld [vmem:[#allocation3 + $0xe0] ss:$16 sps:$4 sm:$0xff]   ;;  %v1223_v37 = vld [vmem:[#allocation3 + $0x104] ss:$16 sps:$4 sm:$0xff]   ;;  %v1227_v38 = vld [vmem:[#allocation3 + $0x10c] ss:$16 sps:$4 sm:$0xff]  }
  0x36   :  { %609 = vmatpush1.bf16.msra.mxu0 %v1189_v14  ;;  %569 = vmatprep.subr.bf16.mxu1 %v1193_v17  ;;  %v1225_v39 = vld [vmem:[#allocation3 + $0x108] ss:$16 sps:$4 sm:$0xff]   ;;  %v1228_v40 = vld [vmem:[#allocation3 + $0x100] ss:$16 sps:$4 sm:$0xff]   ;;  %v1229_v41 = vld [vmem:[#allocation3 + $0x124] ss:$16 sps:$4 sm:$0xff]  }
  0x37   :  { %610 = vmatprep.subr.bf16.mxu0 %v1197_v18  ;;  %v1233_v42 = vld [vmem:[#allocation3 + $0x12c] ss:$16 sps:$4 sm:$0xff]   ;;  %v1231_v43 = vld [vmem:[#allocation3 + $0x128] ss:$16 sps:$4 sm:$0xff]   ;;  %v1234_v44 = vld [vmem:[#allocation3 + $0x120] ss:$16 sps:$4 sm:$0xff]  }
  0x38   :  { %v1235_v45 = vld [vmem:[#allocation3 + $0x144] ss:$16 sps:$4 sm:$0xff]   ;;  %v1239_v46 = vld [vmem:[#allocation3 + $0x14c] ss:$16 sps:$4 sm:$0xff]   ;;  %v1240_v47 = vld [vmem:[#allocation3 + $0x140] ss:$16 sps:$4 sm:$0xff]  }
  0x39   :  { %570 = vmatpush1.bf16.msra.mxu1 %v1198_v20  ;;  %v1237_v48 = vld [vmem:[#allocation3 + $0x148] ss:$16 sps:$4 sm:$0xff]   ;;  %v1241_v49 = vld [vmem:[#allocation3 + $0x164] ss:$16 sps:$4 sm:$0xff]   ;;  %v1245_v50 = vld [vmem:[#allocation3 + $0x16c] ss:$16 sps:$4 sm:$0xff]  }
  0x3a   :  { %611 = vmatpush1.bf16.msra.mxu0 %v1195_v19  ;;  %571 = vmatprep.subr.bf16.mxu1 %v1199_v21  ;;  %v1246_v51 = vld [vmem:[#allocation3 + $0x160] ss:$16 sps:$4 sm:$0xff]   ;;  %v1243_v52 = vld [vmem:[#allocation3 + $0x168] ss:$16 sps:$4 sm:$0xff]   ;;  %v1247_v53 = vld [vmem:[#allocation3 + $0x184] ss:$16 sps:$4 sm:$0xff]  }
  0x3b   :  { %612 = vmatprep.subr.bf16.mxu0 %v1203_v22  ;;  %v1251_v54 = vld [vmem:[#allocation3 + $0x18c] ss:$16 sps:$4 sm:$0xff]   ;;  %v1252_v55 = vld [vmem:[#allocation3 + $0x180] ss:$16 sps:$4 sm:$0xff]   ;;  %v1249_v56 = vld [vmem:[#allocation3 + $0x188] ss:$16 sps:$4 sm:$0xff]  }
  0x3c   :  { %v1253_v57 = vld [vmem:[#allocation3 + $0x1a4] ss:$16 sps:$4 sm:$0xff]   ;;  %v1257_v58 = vld [vmem:[#allocation3 + $0x1ac] ss:$16 sps:$4 sm:$0xff]   ;;  %v1258_v59 = vld [vmem:[#allocation3 + $0x1a0] ss:$16 sps:$4 sm:$0xff]  }
  0x3d   :  { %572 = vmatpush1.bf16.msra.mxu1 %v1204_v24  ;;  %v1255_v60 = vld [vmem:[#allocation3 + $0x1a8] ss:$16 sps:$4 sm:$0xff]   ;;  %v1259_v61 = vld [vmem:[#allocation3 + $0x1c4] ss:$16 sps:$4 sm:$0xff]   ;;  %v1263_v62 = vld [vmem:[#allocation3 + $0x1cc] ss:$16 sps:$4 sm:$0xff]  }
  0x3e   :  { %613 = vmatpush1.bf16.msra.mxu0 %v1201_v23  ;;  %573 = vmatprep.subr.bf16.mxu1 %v1205_v25  ;;  %v1261_v63 = vld [vmem:[#allocation3 + $0x1c8] ss:$16 sps:$4 sm:$0xff]   ;;  %v1264_v0 = vld [vmem:[#allocation3 + $0x1c0] ss:$16 sps:$4 sm:$0xff]   ;;  %v1265_v1 = vld [vmem:[#allocation3 + $0x1e4] ss:$16 sps:$4 sm:$0xff]  }
  0x3f   :  { %614 = vmatprep.subr.bf16.mxu0 %v1209_v26  ;;  %v1269_v2 = vld [vmem:[#allocation3 + $0x1ec] ss:$16 sps:$4 sm:$0xff]   ;;  %v1267_v3 = vld [vmem:[#allocation3 + $0x1e8] ss:$16 sps:$4 sm:$0xff]   ;;  %v1270_v4 = vld [vmem:[#allocation3 + $0x1e0] ss:$16 sps:$4 sm:$0xff]  }
  0x40   :  { %v1271_v5 = vld [vmem:[#allocation5 + $0x40] sm:$0xff]   ;;  %v1446_v8 = vshrl.u32 %v68_v7, 7  ;;  %v1275_v24 = vld [vmem:[#allocation5 + $0x48] sm:$0xff]  }
  0x41   :  { %574 = vmatpush1.bf16.msra.mxu1 %v1210_v28  ;;  %v1272_v6 = vld [vmem:[#allocation5 + $0xc0] sm:$0xff]   ;;  %v1276_v25 = vld [vmem:[#allocation5 + $0xc8] sm:$0xff]   ;;  %v1279_v28 = vld [vmem:[#allocation5 + $0x50] sm:$0xff]  }
  0x42   :  { %615 = vmatpush1.bf16.msra.mxu0 %v1207_v27  ;;  %575 = vmatprep.subr.bf16.mxu1 %v1211_v29  ;;  %v70_v9 = vsub.s32 0, %v1446_v8  ;;  %v66_v10 = vld [vmem:[%s1477_s2] sm:$0x3]  ;;  %v74_v11 = vsub.s32 1, %v1446_v8  ;;  %v1277_v26 = vld [vmem:[#allocation5 + $0x8] sm:$0xff]   ;;  %v1280_v29 = vld [vmem:[#allocation5 + $0xd0] sm:$0xff]  }
  0x43   :  { %616 = vmatprep.subr.bf16.mxu0 %v1215_v30  ;;  %v1273_v21 = vld [vmem:[#allocation5] sm:$0xff]   ;;  %v1278_v27 = vld [vmem:[#allocation5 + $0x88] sm:$0xff]   ;;  %v1281_v30 = vld [vmem:[#allocation5 + $0x10] sm:$0xff]  }
  0x44   :  { %v71_v12 = vrot.slane %v66_v10, %v70_v9  ;;  %v75_v13 = vrot.slane %v66_v10, %v74_v11  ;;  %v1274_v22 = vld [vmem:[#allocation5 + $0x80] sm:$0xff]  }
  0x45   :  { %576 = vmatpush1.bf16.msra.mxu1 %v1216_v32  ;;  %v1283_v32 = vld [vmem:[#allocation5 + $0x58] sm:$0xff]  }
  0x46   :  { %617 = vmatpush1.bf16.msra.mxu0 %v1213_v31  ;;  %577 = vmatprep.subr.bf16.mxu1 %v1217_v33  ;;  %v1282_v31 = vld [vmem:[#allocation5 + $0x90] sm:$0xff]   ;;  %v1284_v33 = vld [vmem:[#allocation5 + $0xd8] sm:$0xff]  }
  0x47   :  { %618 = vmatprep.subr.bf16.mxu0 %v1221_v34  ;;  %v1285_v34 = vld [vmem:[#allocation5 + $0x18] sm:$0xff]  }
  0x49   :  { %578 = vmatpush1.bf16.msra.mxu1 %v1222_v36  ;;  %v1287_v36 = vld [vmem:[#allocation5 + $0x60] sm:$0xff]  }
  0x4a   :  { %619 = vmatpush1.bf16.msra.mxu0 %v1219_v35  ;;  %579 = vmatprep.subr.bf16.mxu1 %v1223_v37  ;;  %v1286_v35 = vld [vmem:[#allocation5 + $0x98] sm:$0xff]   ;;  %v1288_v37 = vld [vmem:[#allocation5 + $0xe0] sm:$0xff]  }
  0x4b   :  { %620 = vmatprep.subr.bf16.mxu0 %v1227_v38  ;;  %v1289_v38 = vld [vmem:[#allocation5 + $0x20] sm:$0xff]  }
  0x4d   :  { %580 = vmatpush1.bf16.msra.mxu1 %v1228_v40  ;;  %v1291_v40 = vld [vmem:[#allocation5 + $0x68] sm:$0xff]  }
  0x4e   :  { %621 = vmatpush1.bf16.msra.mxu0 %v1225_v39  ;;  %581 = vmatprep.subr.bf16.mxu1 %v1229_v41  ;;  %v1290_v39 = vld [vmem:[#allocation5 + $0xa0] sm:$0xff]   ;;  %v1292_v41 = vld [vmem:[#allocation5 + $0xe8] sm:$0xff]  }
  0x4f   :  { %622 = vmatprep.subr.bf16.mxu0 %v1233_v42  ;;  %v1293_v42 = vld [vmem:[#allocation5 + $0x28] sm:$0xff]  }
  0x51   :  { %582 = vmatpush1.bf16.msra.mxu1 %v1234_v44  ;;  %v1295_v44 = vld [vmem:[#allocation5 + $0x70] sm:$0xff]  }
  0x52   :  { %623 = vmatpush1.bf16.msra.mxu0 %v1231_v43  ;;  %583 = vmatprep.subr.bf16.mxu1 %v1235_v45  ;;  %v1294_v43 = vld [vmem:[#allocation5 + $0xa8] sm:$0xff]   ;;  %v1296_v45 = vld [vmem:[#allocation5 + $0xf0] sm:$0xff]  }
  0x53   :  { %624 = vmatprep.subr.bf16.mxu0 %v1239_v46  ;;  %v1297_v46 = vld [vmem:[#allocation5 + $0x30] sm:$0xff]  }
  0x55   :  { %584 = vmatpush1.bf16.msra.mxu1 %v1240_v47  ;;  %v1298_v47 = vld [vmem:[#allocation5 + $0xb0] sm:$0xff]  }
  0x56   :  { %625 = vmatpush1.bf16.msra.mxu0 %v1237_v48  ;;  %585 = vmatprep.subr.bf16.mxu1 %v1241_v49  ;;  %v1299_v48 = vld [vmem:[#allocation5 + $0x78] sm:$0xff]  }
  0x57   :  { %626 = vmatprep.subr.bf16.mxu0 %v1245_v50  ;;  %v1300_v49 = vld [vmem:[#allocation5 + $0xf8] sm:$0xff]  }
  0x58   :  { %v1301_v50 = vld [vmem:[#allocation5 + $0x38] sm:$0xff]  }
  0x59   :  { %586 = vmatpush1.bf16.msra.mxu1 %v1246_v51  ;;  %v1302_v51 = vld [vmem:[#allocation5 + $0xb8] sm:$0xff]  }
  0x5a   :  { %627 = vmatpush1.bf16.msra.mxu0 %v1243_v52  ;;  %587 = vmatprep.subr.bf16.mxu1 %v1247_v53  ;;  %v233_v52 = vsub.s32 2, %v1446_v8  ;;  %v221_v53 = vld [vmem:[%s1479_s4] sm:$0xf] }
  0x5b   :  { %628 = vmatprep.subr.bf16.mxu0 %v1251_v54  ;;  %v237_v54 = vsub.s32 3, %v1446_v8 }
  0x5d   :  { %588 = vmatpush1.bf16.msra.mxu1 %v1252_v55  ;;  %v226_v55 = vrot.slane %v221_v53, %v70_v9 }
  0x5e   :  { %629 = vmatpush1.bf16.msra.mxu0 %v1249_v56  ;;  %589 = vmatprep.subr.bf16.mxu1 %v1253_v57  ;;  %v234_v56 = vrot.slane %v221_v53, %v233_v52  ;;  %v230_v57 = vrot.slane %v221_v53, %v74_v11 }
  0x5f   :  { %630 = vmatprep.subr.bf16.mxu0 %v1257_v58  ;;  %v238_v58 = vrot.slane %v221_v53, %v237_v54 }
  0x61   :  { %590 = vmatpush1.bf16.msra.mxu1 %v1258_v59 }
  0x62   :  { %631 = vmatpush1.bf16.msra.mxu0 %v1255_v60  ;;  %591 = vmatprep.subr.bf16.mxu1 %v1259_v61 }
  0x63   :  { %632 = vmatprep.subr.bf16.mxu0 %v1263_v62 }
  0x65   :  { %592 = vmatpush1.bf16.msra.mxu1 %v1264_v0 }
  0x66   :  { %633 = vmatpush1.bf16.msra.mxu0 %v1261_v63  ;;  %593 = vmatprep.subr.bf16.mxu1 %v1265_v1 }
  0x67   :  { %634 = vmatprep.subr.bf16.mxu0 %v1269_v2 }
  0x69   :  { %594 = vmatpush1.bf16.msra.mxu1 %v1270_v4 }
  0x6a   :  { %635 = vmatpush1.bf16.msra.mxu0 %v1267_v3  ;;  %1124 = vmatprep.subr.bf16.mxu1 %v1271_v5 }
  0x6b   :  { %1146 = vmatprep.subr.bf16.mxu0 %v1272_v6 }
  0xff   :  { %v148_v14 = vpop.f32.mrb[0].mxu0 }
 0x100   :  { %v149_v15 = vadd.f32 %v148_v14, %v71_v12  ;;  %v150_v16 = vpop.f32.mrb[1].mxu0 }
 0x101   :  { %v151_v17 = vadd.f32 %v150_v16, %v75_v13 }
 0x102   :  { %v153_v18 = vmax.f32 %v149_v15, 0.0 }
 0x103   :  { %v154_v19 = vmax.f32 %v151_v17, 0.0  ;;  %v1089_v17 = vld [vmem:[%s1481_s6] ss:$0 sm:$0xff] }
 0x104   :  { %v155_v23 = vpack.c.bf16 %v153_v18, %v153_v18 }
 0x105   :  { %v156_v20 = vpack.c.bf16 %v154_v19, %v154_v19 }
 0x107   :  { %595 = vmatprep.mubr.bf16.mxu1 %v156_v20  ;;  %636 = vmatprep.mubr.bf16.mxu0 %v156_v20 }
 0x108   :  { %596 = vmatmul.mubr.bf16.vlgmr.msra.gmra.mrb[0].mxu1 %v155_v23  ;;  %637 = vmatmul.mubr.bf16.vlgmr.msra.gmra.mrb[4].mxu0 %v155_v23 }
 0x109   :  { %1125 = vmatpush3.bf16.msra.mxu1 %v1273_v21  ;;  %1147 = vmatpush3.bf16.msra.mxu0 %v1274_v22 }
 0x10a   :  { %1126 = vmatprep.subr.bf16.mxu1 %v1275_v24  ;;  %1148 = vmatprep.subr.bf16.mxu0 %v1276_v25 }
 0x10d   :  { %1127 = vmatpush3.bf16.msra.mxu1 %v1277_v26  ;;  %1149 = vmatpush3.bf16.msra.mxu0 %v1278_v27 }
 0x10e   :  { %1128 = vmatprep.subr.bf16.mxu1 %v1279_v28  ;;  %1150 = vmatprep.subr.bf16.mxu0 %v1280_v29  ;;  %v1122_v28 = vld [vmem:[%s1482_s7] ss:$0 sm:$0xff] }
 0x111   :  { %1129 = vmatpush3.bf16.msra.mxu1 %v1281_v30  ;;  %1151 = vmatpush3.bf16.msra.mxu0 %v1282_v31  ;;  %v1123_v31 = vld [vmem:[#allocation2] ss:$0 sm:$0xff] }
 0x112   :  { %1130 = vmatprep.subr.bf16.mxu1 %v1283_v32  ;;  %1152 = vmatprep.subr.bf16.mxu0 %v1284_v33 }
 0x115   :  { %1131 = vmatpush3.bf16.msra.mxu1 %v1285_v34  ;;  %1153 = vmatpush3.bf16.msra.mxu0 %v1286_v35 }
 0x116   :  { %1132 = vmatprep.subr.bf16.mxu1 %v1287_v36  ;;  %1154 = vmatprep.subr.bf16.mxu0 %v1288_v37 }
 0x119   :  { %1133 = vmatpush3.bf16.msra.mxu1 %v1289_v38  ;;  %1155 = vmatpush3.bf16.msra.mxu0 %v1290_v39 }
 0x11a   :  { %1134 = vmatprep.subr.bf16.mxu1 %v1291_v40  ;;  %1156 = vmatprep.subr.bf16.mxu0 %v1292_v41 }
 0x11d   :  { %1135 = vmatpush3.bf16.msra.mxu1 %v1293_v42  ;;  %1157 = vmatpush3.bf16.msra.mxu0 %v1294_v43 }
 0x11e   :  { %1136 = vmatprep.subr.bf16.mxu1 %v1295_v44  ;;  %1158 = vmatprep.subr.bf16.mxu0 %v1296_v45 }
 0x121   :  { %1137 = vmatpush3.bf16.msra.mxu1 %v1297_v46  ;;  %1159 = vmatpush3.bf16.msra.mxu0 %v1298_v47 }
 0x122   :  { %1138 = vmatprep.subr.bf16.mxu1 %v1299_v48  ;;  %1160 = vmatprep.subr.bf16.mxu0 %v1300_v49 }
 0x125   :  { %1139 = vmatpush3.bf16.msra.mxu1 %v1301_v50  ;;  %1161 = vmatpush3.bf16.msra.mxu0 %v1302_v51 }
 0x1db   :  { %v597_v59 = vpop.f32.mrb[0].mxu1  ;;  %v638_v60 = vpop.f32.mrb[4].mxu0 }
 0x1dc   :  { %v598_v61 = vadd.f32 %v597_v59, %v226_v55  ;;  %v639_v62 = vadd.f32 %v638_v60, %v234_v56  ;;  %v599_v63 = vpop.f32.mrb[1].mxu1  ;;  %v640_v0 = vpop.f32.mrb[5].mxu0 }
 0x1dd   :  { %v600_v1 = vadd.f32 %v599_v63, %v230_v57  ;;  %v641_v2 = vadd.f32 %v640_v0, %v238_v58  ;;  %v601_v3 = vpop.f32.mrb[2].mxu1  ;;  %v642_v4 = vpop.f32.mrb[6].mxu0 }
 0x1de   :  { %v645_v5 = vmax.f32 %v598_v61, 0.0  ;;  %v647_v6 = vmax.f32 %v639_v62, 0.0  ;;  %v602_v7 = vpop.f32.mrb[3].mxu1  ;;  %v643_v10 = vpop.f32.mrb[7].mxu0 }
 0x1df   :  { %v646_v9 = vmax.f32 %v600_v1, 0.0  ;;  %v648_v12 = vmax.f32 %v641_v2, 0.0 }
 0x1e0   :  { %v649_v11 = vpack.c.bf16 %v645_v5, %v645_v5  ;;  %v651_v14 = vpack.c.bf16 %v647_v6, %v647_v6 }
 0x1e1   :  { %v650_v13 = vpack.c.bf16 %v646_v9, %v646_v9  ;;  %v652_v8 = vpack.c.bf16 %v648_v12, %v648_v12 }
 0x1e3   :  { %948 = vmatprep.mubr.bf16.mxu1 %v650_v13  ;;  %988 = vmatprep.mubr.bf16.mxu0 %v652_v8 }
 0x1e4   :  { %949 = vmatmul.mubr.bf16.vlgmr.msra.gmra.mrb[4].mxu1 %v649_v11  ;;  %989 = vmatmul.mubr.bf16.vlgmr.msra.gmra.mrb[8].mxu0 %v651_v14 }
 0x2b7   :  { %v1140_v15 = vpop.f32.mrb[4].mxu1  ;;  %v1162_v16 = vpop.f32.mrb[8].mxu0 }
 0x2b8   :  { %v1141_v18 = vpop.f32.mrb[5].mxu1  ;;  %v1163_v19 = vpop.f32.mrb[9].mxu0 }
 0x2b9   :  { %v1142_v20 = vadd.f32 %v1141_v18, %v1140_v15  ;;  %v1164_v21 = vadd.f32 %v1163_v19, %v1162_v16  ;;  %v1143_v22 = vpop.f32.mrb[6].mxu1  ;;  %v1165_v23 = vpop.f32.mrb[10].mxu0 }
 0x2ba   :  { %v1144_v24 = vpop.f32.mrb[7].mxu1  ;;  %v1166_v25 = vpop.f32.mrb[11].mxu0 }
 0x2bb   :  { %v951_v26 = vadd.f32 %v1142_v20, %v1089_v17 }
 0x2bd   :  { %v991_v27 = vadd.f32 %v1164_v21, %v951_v26 }
 0x2bf   :  { %v996_v29 = vmax.f32 %v991_v27, 0.0 }
 0x2c1   :  { %v1004_v30 = vmul.f32 %v1122_v28, %v996_v29 }
 0x2c3   :  { %1005 = vadd.xlane.f32.xlu0 %v1004_v30 }
 0x350   :  { %v1006_v32 = vpop.xlane.xlu0 %1005 }
 0x351   :  { %v1014_v33 = vadd.f32 %v1123_v31, %v1006_v32 }
 0x353   :  { %1303 = vtanh.f32 %v1014_v33 }
 0x35d   :  { %v1304_v34 = vpop.eup %1303 }
 0x35e   :  { %1017 = vst.msk [vmem:[%s1484_s9] sm:$0xff] %vm1016_vm1, %v1304_v34 }
 0x35f   :  { %1022 = vsyncpa [#allocation4], 1 }
 0x360   :  { %1023 = vsyncpa [#allocation6], 1 }

</bundles_post_ra>
